<compile_context>
chip_gen: v6e
topology: v6e:2x2x1
jax: 0.10.0
libtpu: 0.0.40
codegen_flags: <defaults>
</compile_context>

<pallas_src>
import jax
import jax.numpy as jnp
from jax.experimental import pallas as pl
from jax.experimental.pallas import tpu as pltpu


def _round_up(x, m):
    return ((x + m - 1) // m) * m


def _largest_divisor_multiple(n, unit, cap):
    """Largest multiple of `unit` that divides n and is <= cap; else n."""
    if n % unit != 0:
        return n
    t = (min(cap, n) // unit) * unit
    while t >= unit and n % t != 0:
        t -= unit
    return t if t >= unit else n


def _pick_block_s(S, cap=256):
    # Cap ts so the live (bm*ts, Fp) f32 scores temp stays bounded.
    return _largest_divisor_multiple(S, 8, cap)


def _pick_block_b(B, ts, D, Fp, budget_bytes=6 * 1024 * 1024):
    # Per-batch-row bytes per grid step:
    #   2 * ts*D*4   double-buffered f32 x tile
    #   + ts*Fp*4    f32 scores temp
    #   + 2 * Fp*4   pooled output (double-buffered)
    per_row = 2 * ts * D * 4 + ts * Fp * 4 + 2 * Fp * 4
    cap = max(8, budget_bytes // per_row)
    if B % 8 != 0:
        return B                      # small / odd batch: single block (== B)
    # Aim for >= 2 batch blocks so v7x's second TensorCore has work.
    cap = min(cap, max(8, B // 2))
    return _largest_divisor_multiple(B, 8, cap)


def textcnn_pool_kernel(x_ref, wc_ref, pooled_ref):
    # x_ref:      (bm, ts, D)  f32   (activation stream; cast to bf16 here)
    # wc_ref:     (D, Fp)      bf16  (conv weight, pre-transposed, F padded)
    # pooled_ref: (bm, Fp)     f32   (running max of RAW scores over seq axis)
    s = pl.program_id(1)

    @pl.when(s == 0)
    def _():
        # Raw (pre-bias, pre-relu) scores can be negative -> init with -inf.
        pooled_ref[...] = jnp.full(pooled_ref.shape, -jnp.inf,
                                   dtype=pooled_ref.dtype)

    bm, ts, d = x_ref.shape

    # Conv2d(1, F, (1, D)) == one lane-dense 2D matmul on the MXU.
    x2d = x_ref[...].reshape(bm * ts, d).astype(jnp.bfloat16)   # (bm*ts, D)
    scores = jnp.dot(x2d, wc_ref[...],
                     preferred_element_type=jnp.float32)        # (bm*ts, Fp)

    # Per-step max over this sequence tile, then running max into the output.
    step_max = jnp.max(scores.reshape(bm, ts, -1), axis=1)      # (bm, Fp)
    pooled_ref[...] = jnp.maximum(pooled_ref[...], step_max)


def textcnn_forward(x, wc, bc, wf, bf, *, block_b=None, block_s=None):
    """x:(B,S,D) f32, wc:(F,D), bc:(1,F), wf:(C,F), bf:(1,C) — torch layouts."""
    B, S, D = x.shape
    F = wc.shape[0]

    Fp = _round_up(F, 128)               # lane-dense filter dim (NOT 256)

    ts = _pick_block_s(S) if block_s is None else block_s
    assert S % ts == 0 and (ts == S or ts % 8 == 0), \
        "block_s must divide S and be a multiple of 8 (or equal S)"
    bm = _pick_block_b(B, ts, D, Fp) if block_b is None else block_b
    assert B % bm == 0 and (bm == B or bm % 8 == 0), \
        "block_b must divide B and be a multiple of 8 (or equal B)"

    # One-time weight prep (tiny): pre-transpose + bf16 cast + F padding.
    wc_t = jnp.zeros((D, Fp), jnp.bfloat16)
    wc_t = wc_t.at[:, :F].set(wc.T.astype(jnp.bfloat16))        # (D, Fp)

    pooled = pl.pallas_call(
        textcnn_pool_kernel,
        out_shape=jax.ShapeDtypeStruct((B, Fp), jnp.float32),
        grid_spec=pltpu.PrefetchScalarGridSpec(
            num_scalar_prefetch=0,
            grid=(B // bm, S // ts),                 # reduction (seq) axis last
            in_specs=[
                # Last block dim == full D (allowed even when D % 128 != 0).
                pl.BlockSpec((bm, ts, D), lambda i, s: (i, s, 0)),
                pl.BlockSpec((D, Fp), lambda i, s: (0, 0)),
            ],
            out_specs=pl.BlockSpec((bm, Fp), lambda i, s: (i, 0)),
        ),
        compiler_params=pltpu.CompilerParams(
            dimension_semantics=("parallel", "arbitrary"),
            vmem_limit_bytes=32 * 1024 * 1024,      # safe on v7x's 64 MiB VMEM
        ),
    )(x, wc_t)

    # Deferred bias + ReLU (once per pooled element, not per position).
    pooled_f = jnp.maximum(pooled[:, :F] + bc, 0.0)              # (B, F)

    # Dropout is identity at inference.  Tiny Linear(F, C) stays in XLA so the
    # Pallas output is lane-dense and wf is transposed once, outside the grid.
    # TODO(synk): training-mode dropout (random mask) is not implemented.
    return jnp.dot(pooled_f, wf.T.astype(jnp.float32)) + bf


def reference_forward(x, wc, bc, wf, bf):
    # Mirrors the kernel's bf16 quantization of x / conv weight for the MXU.
    xb = x.astype(jnp.bfloat16).astype(jnp.float32)
    wcb = wc.astype(jnp.bfloat16).astype(jnp.float32)
    scores = jnp.einsum("bsd,fd->bsf", xb, wcb) + bc[None, :, :]
    scores = jnp.maximum(scores, 0.0)
    pooled = jnp.max(scores, axis=1)
    return jnp.dot(pooled, wf.T) + bf


if __name__ == "__main__":
    # Small shapes consistent with the module:
    #   embed dim D = 32, seq len S = 32, batch B = 2,
    #   kernel_sizes=[1] (only k <= 1 convs kept, fc in-dim == num_filters),
    #   num_filters F = 8, num_classes C = 4.
    B, S, D = 2, 32, 32
    F, C = 8, 4

    key = jax.random.PRNGKey(0)
    kx, kwc, kbc, kwf, kbf = jax.random.split(key, 5)

    x = jax.random.normal(kx, (B, S, D), dtype=jnp.float32)
    # Conv2d(1, F, (1, D)) weight (F,1,1,D) stored squeezed as (F, D).
    wc = jax.random.normal(kwc, (F, D), dtype=jnp.float32) * 0.1
    bc = jax.random.normal(kbc, (1, F), dtype=jnp.float32) * 0.1
    wf = jax.random.normal(kwf, (C, F), dtype=jnp.float32) * 0.1
    bf = jax.random.normal(kbf, (1, C), dtype=jnp.float32) * 0.1

    ref = reference_forward(x, wc, bc, wf, bf)

    # Default tiling: at this tiny size it is a single grid step (no multi-step
    # overhead — per the review, multi-step grids at 16 KB are pure overhead).
    fwd = jax.jit(lambda x, wc, bc, wf, bf: textcnn_forward(x, wc, bc, wf, bf))
    out = jax.block_until_ready(fwd(x, wc, bc, wf, bf))
    assert out.shape == (B, C)
    assert jnp.allclose(out, ref, atol=2e-3, rtol=2e-3), \
        float(jnp.max(jnp.abs(out - ref)))

    # Correctness-only run with block_s=16 to exercise the running-max
    # accumulator (-inf init + deferred bias/relu) across 2 sequence steps.
    fwd2 = jax.jit(lambda x, wc, bc, wf, bf:
                   textcnn_forward(x, wc, bc, wf, bf, block_s=16))
    out2 = jax.block_until_ready(fwd2(x, wc, bc, wf, bf))
    assert jnp.allclose(out2, ref, atol=2e-3, rtol=2e-3), \
        float(jnp.max(jnp.abs(out2 - ref)))

    print("KERNEL_OK")
</pallas_src>

<mosaic_0001>
module attributes {stable_mosaic.version = 11 : i64} {
  func.func @textcnn_pool_kernel(%arg0: i32, %arg1: i32, %arg2: memref<2x32x32xf32, #tpu.memory_space<vmem>>, %arg3: memref<32x128xbf16, #tpu.memory_space<vmem>>, %arg4: memref<2x128xf32, #tpu.memory_space<vmem>>) attributes {dimension_semantics = [#tpu.dimension_semantics<parallel>, #tpu.dimension_semantics<arbitrary>], iteration_bounds = array<i64: 1, 1>, scalar_prefetch = 0 : i64, scratch_operands = 0 : i64, tpu.core_type = #tpu.core_type<tc>, window_params = [{transform_indices = @transform_0, window_bounds = array<i64: 2, 32, 32>}, {pipeline_mode = #tpu.pipeline_mode<synchronous>, transform_indices = @transform_1, window_bounds = array<i64: 32, 128>}, {transform_indices = @transform_2, window_bounds = array<i64: 2, 128>}]} {
    %c0_i32 = arith.constant 0 : i32
    %0 = arith.cmpi eq, %arg1, %c0_i32 : i32
    %1 = arith.extui %0 : i1 to i32
    %c0_i32_0 = arith.constant 0 : i32
    %2 = arith.cmpi ne, %1, %c0_i32_0 : i32
    scf.if %2 {
      %cst_10 = arith.constant 0xFF800000 : f32
      %13 = vector.broadcast %cst_10 : f32 to vector<2x128xf32>
      %c0_11 = arith.constant 0 : index
      %c0_12 = arith.constant 0 : index
      %14 = vector.load %arg4[%c0_11, %c0_12] : memref<2x128xf32, #tpu.memory_space<vmem>>, vector<2x128xf32>
      tpu.vector_store %arg4[%c0_11, %c0_12], %13 {strides = array<i32>} : memref<2x128xf32, #tpu.memory_space<vmem>>, vector<2x128xf32>,
    } else {
    }
    %c0 = arith.constant 0 : index
    %c0_1 = arith.constant 0 : index
    %c0_2 = arith.constant 0 : index
    %3 = vector.load %arg2[%c0, %c0_1, %c0_2] : memref<2x32x32xf32, #tpu.memory_space<vmem>>, vector<2x32x32xf32>
    %4 = vector.shape_cast %3 : vector<2x32x32xf32> to vector<64x32xf32>
    %5 = arith.truncf %4 : vector<64x32xf32> to vector<64x32xbf16>
    %c0_3 = arith.constant 0 : index
    %c0_4 = arith.constant 0 : index
    %6 = vector.load %arg3[%c0_3, %c0_4] : memref<32x128xbf16, #tpu.memory_space<vmem>>, vector<32x128xbf16>
    %cst = arith.constant dense<0.000000e+00> : vector<64x128xf32>
    %7 = tpu.matmul %5, %6, %cst {dimension_numbers = #tpu.dot_dimension_numbers<[1], [0], [0], [1], [0, 0, 1, 1], [], []>} : vector<64x32xbf16>, vector<32x128xbf16>, vector<64x128xf32> -> vector<64x128xf32>
    %8 = vector.shape_cast %7 : vector<64x128xf32> to vector<2x32x128xf32>
    %cst_5 = arith.constant dense<0xFF800000> : vector<2x128xf32>
    %9 = vector.multi_reduction <maximumf>, %8, %cst_5 [1] : vector<2x32x128xf32> to vector<2x128xf32>
    %c0_6 = arith.constant 0 : index
    %c0_7 = arith.constant 0 : index
    %10 = vector.load %arg4[%c0_6, %c0_7] : memref<2x128xf32, #tpu.memory_space<vmem>>, vector<2x128xf32>
    %11 = arith.maximumf %10, %9 : vector<2x128xf32>
    %c0_8 = arith.constant 0 : index
    %c0_9 = arith.constant 0 : index
    %12 = vector.load %arg4[%c0_8, %c0_9] : memref<2x128xf32, #tpu.memory_space<vmem>>, vector<2x128xf32>
    tpu.vector_store %arg4[%c0_8, %c0_9], %11 {strides = array<i32>} : memref<2x128xf32, #tpu.memory_space<vmem>>, vector<2x128xf32>,
    return
  }
  func.func @transform_0(%arg0: i32, %arg1: i32) -> (i32, i32, i32) {
    %c0_i32 = arith.constant 0 : i32
    %c0_i32_0 = arith.constant 0 : i32
    return %arg0, %arg1, %c0_i32 : i32, i32, i32
  }
  func.func @transform_1(%arg0: i32, %arg1: i32) -> (i32, i32) {
    %c0_i32 = arith.constant 0 : i32
    %c0_i32_0 = arith.constant 0 : i32
    %c0_i32_1 = arith.constant 0 : i32
    return %c0_i32, %c0_i32_0 : i32, i32
  }
  func.func @transform_2(%arg0: i32, %arg1: i32) -> (i32, i32) {
    %c0_i32 = arith.constant 0 : i32
    %c0_i32_0 = arith.constant 0 : i32
    return %arg0, %c0_i32 : i32, i32
  }
}

</mosaic_0001>

<bundles_post_ra>
// kernel: _lambda_.1
= control target key start
LH: loop header
LB: loop body
LE: loop exit
PB: predicated region body
PF: predicated region fallthrough
CT: control target
= control target key end

     0   :  { %vm45_vm0 = vcmask 261120   ;;  %v184_v14 = vmov -inf   ;;  %vm144_vm1 = vcmask 1041409   ;;  %s243_s1 = inlined_call_operand.vmem [shape: bf16[32,128], index: 1, kind: input, shape index: {}]   ;;  %s244_s0 = inlined_call_operand.vmem [shape: f32[2,32,32], index: 0, kind: input, shape index: {}]   ;;  %s245_s2 = inlined_call_operand.vmem [shape: f32[2,128], index: 2, kind: output, shape index: {}]  }
   0x1   :  { %v182_v0 = vld [vmem:[%s243_s1 + $0x8] sm:$0xff]   ;;  %v183_v1 = vld [vmem:[%s243_s1] sm:$0xff]   ;;  %v19_v7 = vld [vmem:[%s244_s0 + $0x10] sm:$0xff]  ;;  %16 = vst [vmem:[%s245_s2] sm:$0x3] %v184_v14 }
   0x2   :  { %165 = vmatprep.subr.bf16.mxu0 %v182_v0  ;;  %177 = vmatprep.subr.bf16.mxu1 %v182_v0  ;;  %v17_v2 = vld [vmem:[%s244_s0] sm:$0xff]  ;;  %v18_v3 = vld [vmem:[%s244_s0 + $0x8] sm:$0xff]  ;;  %v20_v8 = vld [vmem:[%s244_s0 + $0x18] sm:$0xff] }
   0x3   :  { %v21_v4 = vld [vmem:[%s244_s0 + $0x20] sm:$0xff]  ;;  %166 = vmatpush3.bf16.msra.mxu0 %v182_v0  ;;  %179 = vmatpush3.bf16.msra.mxu1 %v182_v0  ;;  %v25_v5 = vpack.c.bf16 %v18_v3, %v17_v2  ;;  %v22_v6 = vld [vmem:[%s244_s0 + $0x28] sm:$0xff]  ;;  %v23_v10 = vld [vmem:[%s244_s0 + $0x30] sm:$0xff]  ;;  %v26_v12 = vpack.c.bf16 %v20_v8, %v19_v7 }
   0x4   :  { %167 = vmatprep.subr.bf16.mxu0 %v183_v1  ;;  %178 = vmatprep.subr.bf16.mxu1 %v183_v1  ;;  %v27_v9 = vpack.c.bf16 %v22_v6, %v21_v4  ;;  %v24_v11 = vld [vmem:[%s244_s0 + $0x38] sm:$0xff] }
   0x5   :  { %169 = vmatprep.mubr.msk.bf16.mxu0 %vm45_vm0, %v25_v5  ;;  %v28_v13 = vpack.c.bf16 %v24_v11, %v23_v10 }
   0x6   :  { %173 = vmatprep.mubr.msk.bf16.mxu1 %vm45_vm0, %v27_v9 }
   0x7   :  { %168 = vmatpush3.bf16.msra.mxu0 %v183_v1  ;;  %180 = vmatpush3.bf16.msra.mxu1 %v183_v1 }
   0x8   :  { %v141_v41 = vld [vmem:[%s245_s2] sm:$0x3] }
   0xa   :  { %170 = vmatmul.mubr.msk.bf16.vlgmr.msra.gmra.mxu0 %vm45_vm0, %v26_v12  ;;  %174 = vmatmul.mubr.msk.bf16.vlgmr.msra.gmra.mxu1 %vm45_vm0, %v28_v13 }
  0xca   :  { %v171_v15 = vpop.f32.mrf.mxu0  ;;  %v175_v16 = vpop.f32.mrf.mxu1 }
  0xcc   :  { %v92_v17 = vpop.f32.mrf.mxu0  ;;  %v108_v18 = vpop.f32.mrf.mxu1 }
  0xcd   :  { %v123_v23 = vmax.f32 %v92_v17, %v171_v15  ;;  %v132_v24 = vmax.f32 %v108_v18, %v175_v16 }
  0xce   :  { %v172_v19 = vpop.f32.mrf.mxu0  ;;  %v176_v20 = vpop.f32.mrf.mxu1 }
  0xd0   :  { %v95_v21 = vpop.f32.mrf.mxu0  ;;  %v111_v22 = vpop.f32.mrf.mxu1 }
  0xd1   :  { %v124_v25 = vmax.f32 %v95_v21, %v172_v19  ;;  %v133_v26 = vmax.f32 %v111_v22, %v176_v20 }
  0xd3   :  { %v125_v27 = vmax.f32 %v123_v23, %v124_v25  ;;  %v134_v28 = vmax.f32 %v132_v24, %v133_v26 }
  0xd5   :  { %v126_v29 = vrot.slane %v125_v27, 4  ;;  %v135_v30 = vrot.slane %v134_v28, 4 }
  0xd7   :  { %v127_v31 = vmax.f32 %v125_v27, %v126_v29  ;;  %v136_v32 = vmax.f32 %v134_v28, %v135_v30 }
  0xd9   :  { %v128_v33 = vrot.slane %v127_v31, 2  ;;  %v137_v34 = vrot.slane %v136_v32, 2 }
  0xdb   :  { %v129_v35 = vmax.f32 %v127_v31, %v128_v33  ;;  %v138_v36 = vmax.f32 %v136_v32, %v137_v34 }
  0xdd   :  { %v130_v37 = vrot.slane %v129_v35, 1  ;;  %v139_v38 = vrot.slane %v138_v36, 1 }
  0xdf   :  { %v131_v39 = vmax.f32 %v129_v35, %v130_v37  ;;  %v140_v40 = vmax.f32 %v138_v36, %v139_v38 }
  0xe1   :  { %v145_v42 = vsel %vm144_vm1, %v140_v40, %v131_v39 }
  0xe2   :  { %v147_v43 = vmax.f32 %v141_v41, %v145_v42 }
  0xe4   :  { %148 = vst [vmem:[%s245_s2] sm:$0x3] %v147_v43 }

</bundles_post_ra>
